<compile_context>
chip_gen: v5e
topology: v5e:2x2
jax: 0.10.0
libtpu: 0.0.40
codegen_flags: <defaults>
</compile_context>

<pallas_src>
import functools

import jax
import jax.numpy as jnp
from jax.experimental import pallas as pl
from jax.experimental.pallas import tpu as pltpu


def _layernorm_kernel(x_ref, w_ref, b_ref, o_ref, *, eps, inv_dim):
    # Params are small VMEM-resident tiles (constant index_map); read once.
    w = w_ref[...].astype(jnp.float32)                   # (1, dim)
    b = b_ref[...].astype(jnp.float32)                   # (1, dim)

    x = x_ref[...].astype(jnp.float32)                   # (row_tile, dim)
    mean = jnp.sum(x, axis=-1, keepdims=True) * inv_dim
    centered = x - mean
    var = jnp.sum(centered * centered, axis=-1, keepdims=True) * inv_dim  # biased
    inv = jax.lax.rsqrt(var + eps)
    y = centered * inv * w + b
    o_ref[...] = y.astype(o_ref.dtype)


def _pick_tiling(rows, dim, itemsize):
    """Choose (row_tile, vmem_limit_bytes) from the chip's VMEM capacity."""
    try:
        vmem_physical = pltpu.get_tpu_info().vmem_capacity_bytes
    except Exception:
        vmem_physical = 64 * 1024 * 1024  # conservative fallback (v7x per-TC)

    # Raise the scoped VMEM limit above the 16/32 MiB default; keep headroom
    # below the physical capacity.
    vmem_limit = min((vmem_physical * 3) // 4, 100 * 1024 * 1024)

    # Per-row VMEM cost: input + output, double-buffered (4 * dim * itemsize),
    # plus ~2 f32 compute temporaries (8 * dim bytes). Budget half the scoped
    # limit to stay clear of spills.
    per_row = 4 * dim * itemsize + 8 * dim
    budget = vmem_limit // 2
    row_tile = budget // max(per_row, 1)
    row_tile = max(8, min(1024, (row_tile // 8) * 8))

    if rows <= 8:
        row_tile = rows                          # full-extent block (always legal)
    else:
        row_tile = min(row_tile, rows)
        row_tile = max(8, (row_tile // 8) * 8)   # multiple of 8 sublanes

    return row_tile, vmem_limit


def layer_norm_pallas(x, weight, bias, eps=1e-5, row_tile=None):
    """LayerNorm over the last axis of x, with weight/bias of shape (dim,)."""
    orig_shape = x.shape
    dim = orig_shape[-1]
    assert weight.shape == (dim,) and bias.shape == (dim,)

    x2d = x.reshape(-1, dim)
    rows = x2d.shape[0]
    itemsize = jnp.dtype(x.dtype).itemsize

    auto_tile, vmem_limit = _pick_tiling(rows, dim, itemsize)
    if row_tile is None:
        row_tile = auto_tile

    w2d = weight.reshape(1, dim)
    b2d = bias.reshape(1, dim)

    # TODO(synk): for very large hidden dims that are not multiples of 128,
    # pad the hidden dim once outside the kernel to keep stores lane-dense
    # (small dims like the demo's 32 are legal: the block spans the full dim).
    grid = (pl.cdiv(rows, row_tile),)

    out = pl.pallas_call(
        functools.partial(_layernorm_kernel, eps=eps, inv_dim=1.0 / dim),
        out_shape=jax.ShapeDtypeStruct((rows, dim), x.dtype),
        grid=grid,
        in_specs=[
            pl.BlockSpec((row_tile, dim), lambda i: (i, 0)),
            pl.BlockSpec((1, dim), lambda i: (0, 0)),
            pl.BlockSpec((1, dim), lambda i: (0, 0)),
        ],
        out_specs=pl.BlockSpec((row_tile, dim), lambda i: (i, 0)),
        compiler_params=pltpu.CompilerParams(
            dimension_semantics=("parallel",),
            vmem_limit_bytes=int(vmem_limit),
        ),
    )(x2d, w2d, b2d)

    return out.reshape(orig_shape)


def layer_norm_ref(x, weight, bias, eps=1e-5):
    xf = x.astype(jnp.float32)
    mean = jnp.mean(xf, axis=-1, keepdims=True)
    var = jnp.mean((xf - mean) ** 2, axis=-1, keepdims=True)
    y = (xf - mean) * jax.lax.rsqrt(var + eps)
    return (y * weight + bias).astype(x.dtype)


if __name__ == "__main__":
    key = jax.random.PRNGKey(0)
    batch, seq, hidden = 2, 8, 32

    kx, kw, kb = jax.random.split(key, 3)
    x = jax.random.normal(kx, (batch, seq, hidden), dtype=jnp.float32)
    weight = jnp.ones((hidden,), jnp.float32) + 0.1 * jax.random.normal(kw, (hidden,), jnp.float32)
    bias = jnp.zeros((hidden,), jnp.float32) + 0.1 * jax.random.normal(kb, (hidden,), jnp.float32)

    out = layer_norm_pallas(x, weight, bias, eps=1e-5)
    out = jax.block_until_ready(out)

    ref = layer_norm_ref(x, weight, bias, eps=1e-5)
    assert out.shape == x.shape and out.dtype == x.dtype
    assert jnp.allclose(out, ref, atol=1e-5, rtol=1e-5), "mismatch vs reference"

    print("KERNEL_OK")
</pallas_src>

<mosaic_0001>
module attributes {stable_mosaic.version = 11 : i64} {
  func.func @_layernorm_kernel(%arg0: i32, %arg1: memref<16x32xf32, #tpu.memory_space<vmem>>, %arg2: memref<1x32xf32, #tpu.memory_space<vmem>>, %arg3: memref<1x32xf32, #tpu.memory_space<vmem>>, %arg4: memref<16x32xf32, #tpu.memory_space<vmem>>) attributes {dimension_semantics = [#tpu.dimension_semantics<parallel>], iteration_bounds = array<i64: 1>, scalar_prefetch = 0 : i64, scratch_operands = 0 : i64, tpu.core_type = #tpu.core_type<tc>, window_params = [{transform_indices = @transform_0, window_bounds = array<i64: 16, 32>}, {pipeline_mode = #tpu.pipeline_mode<synchronous>, transform_indices = @transform_1, window_bounds = array<i64: 1, 32>}, {pipeline_mode = #tpu.pipeline_mode<synchronous>, transform_indices = @transform_2, window_bounds = array<i64: 1, 32>}, {transform_indices = @transform_3, window_bounds = array<i64: 16, 32>}]} {
    %c0 = arith.constant 0 : index
    %c0_0 = arith.constant 0 : index
    %0 = vector.load %arg2[%c0, %c0_0] : memref<1x32xf32, #tpu.memory_space<vmem>>, vector<1x32xf32>
    %c0_1 = arith.constant 0 : index
    %c0_2 = arith.constant 0 : index
    %1 = vector.load %arg3[%c0_1, %c0_2] : memref<1x32xf32, #tpu.memory_space<vmem>>, vector<1x32xf32>
    %c0_3 = arith.constant 0 : index
    %c0_4 = arith.constant 0 : index
    %2 = vector.load %arg1[%c0_3, %c0_4] : memref<16x32xf32, #tpu.memory_space<vmem>>, vector<16x32xf32>
    %cst = arith.constant dense<0.000000e+00> : vector<16xf32>
    %3 = vector.multi_reduction <add>, %2, %cst [1] : vector<16x32xf32> to vector<16xf32>
    %4 = vector.shape_cast %3 : vector<16xf32> to vector<16x1xf32>
    %cst_5 = arith.constant 3.125000e-02 : f32
    %5 = vector.broadcast %cst_5 : f32 to vector<16x1xf32>
    %6 = arith.mulf %4, %5 : vector<16x1xf32>
    %7 = vector.broadcast %6 : vector<16x1xf32> to vector<16x32xf32>
    %8 = arith.subf %2, %7 : vector<16x32xf32>
    %9 = arith.mulf %8, %8 : vector<16x32xf32>
    %cst_6 = arith.constant dense<0.000000e+00> : vector<16xf32>
    %10 = vector.multi_reduction <add>, %9, %cst_6 [1] : vector<16x32xf32> to vector<16xf32>
    %11 = vector.shape_cast %10 : vector<16xf32> to vector<16x1xf32>
    %cst_7 = arith.constant 3.125000e-02 : f32
    %12 = vector.broadcast %cst_7 : f32 to vector<16x1xf32>
    %13 = arith.mulf %11, %12 : vector<16x1xf32>
    %cst_8 = arith.constant 9.99999974E-6 : f32
    %14 = vector.broadcast %cst_8 : f32 to vector<16x1xf32>
    %15 = arith.addf %13, %14 : vector<16x1xf32>
    %16 = math.rsqrt %15 : vector<16x1xf32>
    %17 = vector.broadcast %16 : vector<16x1xf32> to vector<16x32xf32>
    %18 = arith.mulf %8, %17 : vector<16x32xf32>
    %19 = vector.broadcast %0 : vector<1x32xf32> to vector<16x32xf32>
    %20 = arith.mulf %18, %19 : vector<16x32xf32>
    %21 = vector.broadcast %1 : vector<1x32xf32> to vector<16x32xf32>
    %22 = arith.addf %20, %21 : vector<16x32xf32>
    %c0_9 = arith.constant 0 : index
    %c0_10 = arith.constant 0 : index
    %23 = vector.load %arg4[%c0_9, %c0_10] : memref<16x32xf32, #tpu.memory_space<vmem>>, vector<16x32xf32>
    tpu.vector_store %arg4[%c0_9, %c0_10], %22 {strides = array<i32>} : memref<16x32xf32, #tpu.memory_space<vmem>>, vector<16x32xf32>,
    return
  }
  func.func @transform_0(%arg0: i32) -> (i32, i32) {
    %c0_i32 = arith.constant 0 : i32
    %c0_i32_0 = arith.constant 0 : i32
    return %arg0, %c0_i32 : i32, i32
  }
  func.func @transform_1(%arg0: i32) -> (i32, i32) {
    %c0_i32 = arith.constant 0 : i32
    %c0_i32_0 = arith.constant 0 : i32
    %c0_i32_1 = arith.constant 0 : i32
    return %c0_i32, %c0_i32_0 : i32, i32
  }
  func.func @transform_2(%arg0: i32) -> (i32, i32) {
    %c0_i32 = arith.constant 0 : i32
    %c0_i32_0 = arith.constant 0 : i32
    %c0_i32_1 = arith.constant 0 : i32
    return %c0_i32, %c0_i32_0 : i32, i32
  }
  func.func @transform_3(%arg0: i32) -> (i32, i32) {
    %c0_i32 = arith.constant 0 : i32
    %c0_i32_0 = arith.constant 0 : i32
    return %arg0, %c0_i32 : i32, i32
  }
}

</mosaic_0001>

<bundles_post_ra>
// kernel: tpu_custom_call.1
= control target key start
LH: loop header
LB: loop body
LE: loop exit
PB: predicated region body
PF: predicated region fallthrough
CT: control target
= control target key end

     0   :  { %8 = vsyncpa [#allocation3], 0  ;;  %s264_s0 = inlined_call_operand.hbm [shape: f32[16,32], index: 0, kind: input, shape index: {}]   ;;  %s265_s1 = inlined_call_operand.hbm [shape: f32[1,32], index: 1, kind: input, shape index: {}]   ;;  %s266_s2 = inlined_call_operand.vmem [shape: f32[1,32], index: 2, kind: input, shape index: {}]   ;;  %s267_s3 = inlined_call_operand.hbm [shape: f32[16,32], index: 3, kind: output, shape index: {}]  }
   0x1   :  { %9 = vsyncpa [#allocation6], 0 }
   0x2   :  { %10 = vsyncpa [#allocation4], 0  ;;  %s15_s14 = sshll.u32 %s264_s0, 4  ;;  %s215_s15 = smov [#allocation2]   ;;  %s16_s14 = int_to_ptr.hbm [resolvable:$true] %s15_s14 }
   0x3   :  { %s17_s16 = sshll.u32 %s215_s15, 4  ;;  %s29_s19 = sshll.u32 %s265_s1, 4  ;;  %s18_s16 = int_to_ptr.vmem [resolvable:$true] %s17_s16  ;;  %s30_s19 = int_to_ptr.hbm [resolvable:$true] %s29_s19 }
   0x4   :  { %s216_s20 = smov 128   ;;  %s217_s21 = smov 8  }
   0x5   :  { %23 = dma.hbm_to_vmem [thread:$0]  %s16_s14, 256, %s18_s16, [#allocation3], %s216_s20, %s216_s20, %s217_s21  }
   0x6   :  { %s218_s22 = smov [#allocation5]  }
   0x7   :  { %s31_s23 = sshll.u32 %s218_s22, 4  ;;  %s32_s23 = int_to_ptr.vmem [resolvable:$true] %s31_s23 }
   0x8   :  { %34 = dma.hbm_to_vmem [thread:$0]  %s30_s19, 16, %s32_s23, [#allocation6]  }
   0x9   :  { %209 = dma.done.wait [#allocation3], 256  }
   0xa   :  { %210 = vsyncadd [#allocation3], 4294967040 }
   0xb   :  { %211 = dma.done.wait [#allocation6], 16  }
   0xc   :  { %212 = vsyncadd [#allocation6], 4294967280  ;;  %vm49_vm0 = vcmask 261120   ;;  %v47_v0 = vld [vmem:[#allocation2] sm:$0xff]  ;;  %v48_v2 = vld [vmem:[#allocation2 + $0x8] sm:$0xff]  ;;  %s219_s24 = smov [#allocation7]  }
   0xd   :  { %v50_v1 = vsel %vm49_vm0, %v47_v0, 0.0  ;;  %v53_v3 = vsel %vm49_vm0, %v48_v2, 0.0  ;;  %v131_v28 = vld [vmem:[#allocation5] ss:$0 sm:$0xff]  ;;  %v132_v32 = vld [vmem:[%s266_s2] ss:$0 sm:$0xff] }
   0xe   :  { %51 = vadd.xlane.f32.xlu0 %v50_v1  ;;  %s110_s25 = sshll.u32 %s219_s24, 4  ;;  %s112_s28 = sshll.u32 %s267_s3, 4  ;;  %s111_s25 = int_to_ptr.vmem [resolvable:$true] %s110_s25  ;;  %s113_s28 = int_to_ptr.hbm [resolvable:$true] %s112_s28 }
  0x16   :  { %54 = vadd.xlane.f32.xlu0 %v53_v3 }
  0x81   :  { %v52_v4 = vpop.xlane.xlu0 %51 }
  0x82   :  { %v56_v5 = vmul.f32 0.03125, %v52_v4 }
  0x84   :  { %v58_v6 = vsub.f32 %v47_v0, %v56_v5 }
  0x86   :  { %v60_v7 = vmul.f32 %v58_v6, %v58_v6 }
  0x88   :  { %v62_v8 = vsel %vm49_vm0, %v60_v7, 0.0 }
  0x89   :  { %63 = vadd.xlane.f32.xlu1 %v62_v8  ;;  %v55_v9 = vpop.xlane.xlu0 %54 }
  0x8a   :  { %v57_v10 = vmul.f32 0.03125, %v55_v9 }
  0x8c   :  { %v59_v11 = vsub.f32 %v48_v2, %v57_v10 }
  0x8e   :  { %v61_v12 = vmul.f32 %v59_v11, %v59_v11 }
  0x90   :  { %v65_v13 = vsel %vm49_vm0, %v61_v12, 0.0 }
  0x91   :  { %66 = vadd.xlane.f32.xlu1 %v65_v13 }
  0xfc   :  { %v64_v14 = vpop.xlane.xlu1 %63 }
  0xfd   :  { %v68_v15 = vmul.f32 0.03125, %v64_v14 }
  0xff   :  { %v70_v16 = vadd.f32 1e-05, %v68_v15 }
 0x101   :  { %133 = vrsqrt.f32 %v70_v16  ;;  %vm78_vm2 = vweird.f32 %v70_v16 }
 0x104   :  { %v67_v17 = vpop.xlane.xlu1 %66 }
 0x105   :  { %v69_v18 = vmul.f32 0.03125, %v67_v17 }
 0x107   :  { %v134_v19 = vpop.eup %133  ;;  %v71_v20 = vadd.f32 1e-05, %v69_v18 }
 0x108   :  { %v73_v21 = vmul.f32 %v134_v19, %v70_v16  ;;  %vm79_vm1 = vweird.f32 %v134_v19 }
 0x109   :  { %135 = vrsqrt.f32 %v71_v20  ;;  %vm80_vm3 = vmor %vm78_vm2, %vm79_vm1  ;;  %vm88_vm5 = vweird.f32 %v71_v20 }
 0x10a   :  { %v74_v22 = vmul.f32 %v134_v19, %v73_v21 }
 0x10c   :  { %v75_v23 = vmul.f32 0.5, %v74_v22 }
 0x10e   :  { %v76_v24 = vsub.f32 1.5, %v75_v23 }
 0x10f   :  { %v136_v25 = vpop.eup %135 }
 0x110   :  { %v77_v26 = vmul.f32 %v134_v19, %v76_v24  ;;  %v83_v27 = vmul.f32 %v136_v25, %v71_v20  ;;  %vm89_vm4 = vweird.f32 %v136_v25 }
 0x111   :  { %vm90_vm6 = vmor %vm88_vm5, %vm89_vm4 }
 0x112   :  { %v81_v29 = vsel %vm80_vm3, %v134_v19, %v77_v26  ;;  %v84_v30 = vmul.f32 %v136_v25, %v83_v27 }
 0x113   :  { %v92_v31 = vmul.f32 %v81_v29, %v58_v6 }
 0x114   :  { %v85_v33 = vmul.f32 0.5, %v84_v30 }
 0x115   :  { %v97_v34 = vmul.f32 %v131_v28, %v92_v31 }
 0x116   :  { %v86_v35 = vsub.f32 1.5, %v85_v33 }
 0x117   :  { %v102_v36 = vadd.f32 %v132_v32, %v97_v34 }
 0x118   :  { %v87_v37 = vmul.f32 %v136_v25, %v86_v35 }
 0x119   :  { %104 = vst.msk [vmem:[#allocation7] sm:$0xff] %vm49_vm0, %v102_v36 }
 0x11a   :  { %v91_v38 = vsel %vm90_vm6, %v136_v25, %v87_v37 }
 0x11b   :  { %v93_v39 = vmul.f32 %v91_v38, %v59_v11 }
 0x11d   :  { %v98_v40 = vmul.f32 %v131_v28, %v93_v39 }
 0x11f   :  { %v103_v41 = vadd.f32 %v132_v32, %v98_v40 }
 0x121   :  { %105 = vst.msk [vmem:[#allocation7 + $0x8] sm:$0xff] %vm49_vm0, %v103_v41 }
 0x122   :  { %118 = dma.vmem_to_hbm [thread:$0]  %s111_s25, 256, %s113_s28, [#allocation4], %s216_s20, %s216_s20, %s217_s21  }
 0x123   :  { %213 = dma.done.wait [#allocation4], 256  }
 0x124   :  { %214 = vsyncadd [#allocation4], 4294967040 }
 0x125   :  { %123 = vsyncpa [#allocation3], 1 }
 0x126   :  { %124 = vsyncpa [#allocation6], 1 }
 0x127   :  { %125 = vsyncpa [#allocation4], 1 }

</bundles_post_ra>
